<compile_context>
chip_gen: v7x
topology: tpu7x:2x2x1
jax: 0.10.0
libtpu: 0.0.40
codegen_flags: <defaults>
</compile_context>

<pallas_src>
import functools
import math

import jax
import jax.numpy as jnp
from jax import lax
from jax.experimental import pallas as pl
from jax.experimental.pallas import tpu as pltpu


def _gqa_kernel(x_ref, wq_ref, bq_ref, wkv_ref, bkv_ref, wm_ref, bm_ref,
                out_ref, probs_ref, k_ref, v_ref,
                *, num_queries_per_group, head_dim, q_tile):
    """Grid = (branch b [parallel], query-tile t [arbitrary])."""
    Qpg, H, TQ = num_queries_per_group, head_dim, q_tile
    t = pl.program_id(1)

    # ---- K / V projection: once per branch, reused by every query tile. ----
    @pl.when(t == 0)
    def _():
        kv = (jnp.dot(x_ref[...], wkv_ref[0],
                      preferred_element_type=jnp.float32) + bkv_ref[0])     # (P, 2H) f32
        k_ref[...] = kv[:, :H].astype(jnp.bfloat16)                         # (P, H)
        v_ref[...] = kv[:, H:].astype(jnp.bfloat16)                         # (P, H)

    # ---- Q projection for this query tile (1/sqrt(H) folded into wq/bq). ----
    row0 = pl.multiple_of(t * TQ, TQ)
    xq = x_ref[pl.ds(row0, TQ), :]                                           # (TQ, E) bf16
    q = (jnp.dot(xq, wq_ref[0], preferred_element_type=jnp.float32)
         + bq_ref[0]).astype(jnp.bfloat16)                                   # (TQ, Qpg*H)

    # Head-major rows so scores/probs land directly in the output layout.
    # Relayout is only Qpg*TQ*H bf16 elements (never P*P-sized).
    qf = jnp.concatenate([q[:, i * H:(i + 1) * H] for i in range(Qpg)],
                         axis=0)                                             # (Qpg*TQ, H)

    # ---- Scores: one MXU push, contraction on H (no materialized K^T). ----
    s = lax.dot_general(qf, k_ref[...], (((1,), (1,)), ((), ())),
                        preferred_element_type=jnp.float32)                  # (Qpg*TQ, P)

    # ---- Batched, numerically-stable softmax over all heads of the branch. ----
    s = s - jnp.max(s, axis=-1, keepdims=True)
    e = jnp.exp(s)
    inv = pl.reciprocal(jnp.sum(e, axis=-1, keepdims=True), approx=False)    # EUP slot
    probs = e * inv                                                          # (Qpg*TQ, P) f32

    # Lane-dense (P-wide) stores directly into the final (Qpg, G, P, P) layout.
    for i in range(Qpg):
        probs_ref[i, 0] = probs[i * TQ:(i + 1) * TQ, :]

    # ---- Attention output + per-branch merge projection (single K=Qpg*H matmul). ----
    pv = jnp.dot(probs.astype(jnp.bfloat16), v_ref[...],
                 preferred_element_type=jnp.float32)                         # (Qpg*TQ, H)
    pv = pv.astype(jnp.bfloat16)
    merged = jnp.concatenate([pv[i * TQ:(i + 1) * TQ, :] for i in range(Qpg)],
                             axis=1)                                         # (TQ, Qpg*H)
    out_ref[0] = (jnp.dot(merged, wm_ref[0], preferred_element_type=jnp.float32)
                  + bm_ref[0])                                               # (TQ, H) f32


def _pick_q_tile(p, target=512):
    """Largest query tile <= target (multiple of 8) that divides P; fallback P."""
    if p <= target:
        return p
    for t in range(target - target % 8, 7, -8):
        if p % t == 0:
            return t
    return p


def gqa_forward(x, params, *, q_tile=None):
    """x: (1, P, E) f32. Returns (projected (1, P, E) f32, attn (Qpg, G*P, P) f32)."""
    wq, bq, wk, bk, wv, bv, wm, bm, wo, bo = params
    G, Qpg, H, E = wq.shape
    P = x.shape[1]
    QpgH = Qpg * H
    scale = 1.0 / math.sqrt(H)

    TQ = q_tile if q_tile is not None else _pick_q_tile(P)
    assert P % TQ == 0
    n_qt = P // TQ

    # ---- one-time layout plumbing (outside the kernel) ----------------------
    x_bf = x[0].astype(jnp.bfloat16)                                              # (P, E)
    wq_t = (wq.reshape(G, QpgH, E) * scale).transpose(0, 2, 1).astype(jnp.bfloat16)  # (G,E,QpgH)
    bq_s = (bq.reshape(G, QpgH) * scale)[:, None, :]                              # (G,1,QpgH) f32
    wkv_t = jnp.concatenate([wk, wv], axis=1).transpose(0, 2, 1).astype(jnp.bfloat16)  # (G,E,2H)
    bkv_b = jnp.concatenate([bk, bv], axis=1)[:, None, :]                         # (G,1,2H) f32
    wm_t = wm.transpose(0, 2, 1).astype(jnp.bfloat16)                             # (G,QpgH,H)
    bm_b = bm[:, None, :]                                                         # (G,1,H) f32

    # VMEM budget: resident x + double-buffered weights/outputs + scratch + temps.
    est = (P * E * 2
           + 2 * (E * QpgH + E * 2 * H + QpgH * H) * 2
           + 2 * (QpgH + 3 * H) * 4
           + 2 * (Qpg * TQ * P + TQ * H) * 4
           + 2 * P * H * 2
           + 8 * Qpg * TQ * P * 4)
    vmem_limit = int(min(max(est, 32 * 1024 * 1024), 64 * 1024 * 1024))

    kernel = functools.partial(_gqa_kernel, num_queries_per_group=Qpg,
                               head_dim=H, q_tile=TQ)

    out, probs = pl.pallas_call(
        kernel,
        out_shape=(jax.ShapeDtypeStruct((G, P, H), jnp.float32),
                   jax.ShapeDtypeStruct((Qpg, G, P, P), jnp.float32)),
        grid=(G, n_qt),
        in_specs=[
            pl.BlockSpec((P, E), lambda b, t: (0, 0)),             # x (resident, bf16)
            pl.BlockSpec((1, E, QpgH), lambda b, t: (b, 0, 0)),    # Wq^T (scaled, bf16)
            pl.BlockSpec((1, 1, QpgH), lambda b, t: (b, 0, 0)),    # bq (scaled, f32)
            pl.BlockSpec((1, E, 2 * H), lambda b, t: (b, 0, 0)),   # [Wk|Wv]^T (bf16)
            pl.BlockSpec((1, 1, 2 * H), lambda b, t: (b, 0, 0)),   # [bk|bv] (f32)
            pl.BlockSpec((1, QpgH, H), lambda b, t: (b, 0, 0)),    # Wm^T (bf16)
            pl.BlockSpec((1, 1, H), lambda b, t: (b, 0, 0)),       # bm (f32)
        ],
        out_specs=(
            pl.BlockSpec((1, TQ, H), lambda b, t: (b, t, 0)),           # per-branch outputs
            pl.BlockSpec((Qpg, 1, TQ, P), lambda b, t: (0, b, t, 0)),   # probs, final layout
        ),
        scratch_shapes=[pltpu.VMEM((P, H), jnp.bfloat16),   # K (per branch)
                        pltpu.VMEM((P, H), jnp.bfloat16)],  # V (per branch)
        compiler_params=pltpu.CompilerParams(
            dimension_semantics=("parallel", "arbitrary"),
            vmem_limit_bytes=vmem_limit),
    )(x_bf, wq_t, bq_s, wkv_t, bkv_b, wm_t, bm_b)

    # Single output projection over all branches (K = G*H instead of G small K=H
    # matmuls) — keeps the branch grid axis fully parallel for v7x megacore.
    projected = (jnp.einsum('gph,egh->pe', out, wo.reshape(E, G, H)) + bo)[None]
    # (Qpg, G, P, P) -> (Qpg, G*P, P) is a free reshape (torch.cat over branches, dim=1).
    attn = probs.reshape(Qpg, G * P, P)
    return projected, attn


def gqa_reference(x, params):
    """Pure-JAX f32 mirror of the PyTorch forward (eval mode)."""
    wq, bq, wk, bk, wv, bv, wm, bm, wo, bo = params
    G, Qpg, H, E = wq.shape
    x2 = x[0]
    branch_outs, probs_all = [], []
    for b in range(G):
        k = x2 @ wk[b].T + bk[b]
        v = x2 @ wv[b].T + bv[b]
        a_list, p_list = [], []
        for q in range(Qpg):
            qh = x2 @ wq[b, q].T + bq[b, q]
            s = (qh @ k.T) / math.sqrt(H)
            p = jax.nn.softmax(s, axis=-1)
            p_list.append(p)
            a_list.append(p @ v)
        merged = jnp.concatenate(a_list, axis=-1)
        branch_outs.append(merged @ wm[b].T + bm[b])
        probs_all.append(jnp.stack(p_list, axis=0))
    concat = jnp.concatenate(branch_outs, axis=-1)
    proj = concat @ wo.T + bo
    attn = jnp.concatenate(probs_all, axis=1)
    return proj[None], attn


def init_params(key, embed_dim, num_query_heads, num_queries_per_group):
    H = embed_dim // num_query_heads
    G = num_query_heads // num_queries_per_group
    Qpg = num_queries_per_group
    E = embed_dim
    ks = jax.random.split(key, 10)
    scale = 0.1
    wq = scale * jax.random.normal(ks[0], (G, Qpg, H, E), jnp.float32)
    bq = scale * jax.random.normal(ks[1], (G, Qpg, H), jnp.float32)
    wk = scale * jax.random.normal(ks[2], (G, H, E), jnp.float32)
    bk = scale * jax.random.normal(ks[3], (G, H), jnp.float32)
    wv = scale * jax.random.normal(ks[4], (G, H, E), jnp.float32)
    bv = scale * jax.random.normal(ks[5], (G, H), jnp.float32)
    wm = scale * jax.random.normal(ks[6], (G, H, Qpg * H), jnp.float32)  # per-branch merge Linear
    bm = scale * jax.random.normal(ks[7], (G, H), jnp.float32)
    wo = scale * jax.random.normal(ks[8], (E, G * H), jnp.float32)       # project_outputs
    bo = scale * jax.random.normal(ks[9], (E,), jnp.float32)
    return (wq, bq, wk, bk, wv, bv, wm, bm, wo, bo)


if __name__ == "__main__":
    embed_dim = 32
    num_query_heads = 4
    num_queries_per_group = 2          # -> head_dim H = 8, num_kv_heads G = 2
    seq_len = 8

    key = jax.random.PRNGKey(0)
    k_x, k_p = jax.random.split(key)
    x = jax.random.normal(k_x, (1, seq_len, embed_dim), jnp.float32)
    params = init_params(k_p, embed_dim, num_query_heads, num_queries_per_group)

    proj, attn = jax.block_until_ready(gqa_forward(x, params))
    proj_ref, attn_ref = gqa_reference(x, params)

    assert proj.shape == (1, seq_len, embed_dim)
    assert attn.shape == (num_queries_per_group,
                          (num_query_heads // num_queries_per_group) * seq_len,
                          seq_len)
    # bf16 MXU inputs (f32 accumulation / f32 softmax) -> loosened tolerance vs f32 ref.
    assert jnp.allclose(proj, proj_ref, atol=2e-2, rtol=2e-2)
    assert jnp.allclose(attn, attn_ref, atol=2e-2, rtol=2e-2)
    print("KERNEL_OK")
</pallas_src>

<mosaic_0001>
module attributes {stable_mosaic.version = 11 : i64} {
  func.func @_gqa_kernel(%arg0: i32, %arg1: i32, %arg2: memref<8x32xbf16, #tpu.memory_space<vmem>>, %arg3: memref<1x32x16xbf16, #tpu.memory_space<vmem>>, %arg4: memref<1x1x16xf32, #tpu.memory_space<vmem>>, %arg5: memref<1x32x16xbf16, #tpu.memory_space<vmem>>, %arg6: memref<1x1x16xf32, #tpu.memory_space<vmem>>, %arg7: memref<1x16x8xbf16, #tpu.memory_space<vmem>>, %arg8: memref<1x1x8xf32, #tpu.memory_space<vmem>>, %arg9: memref<1x8x8xf32, #tpu.memory_space<vmem>>, %arg10: memref<2x1x8x8xf32, #tpu.memory_space<vmem>>, %arg11: memref<8x8xbf16, #tpu.memory_space<vmem>>, %arg12: memref<8x8xbf16, #tpu.memory_space<vmem>>) attributes {dimension_semantics = [#tpu.dimension_semantics<parallel>, #tpu.dimension_semantics<arbitrary>], iteration_bounds = array<i64: 2, 1>, scalar_prefetch = 0 : i64, scratch_operands = 2 : i64, tpu.core_type = #tpu.core_type<tc>, window_params = [{pipeline_mode = #tpu.pipeline_mode<synchronous>, transform_indices = @transform_0, window_bounds = array<i64: 8, 32>}, {transform_indices = @transform_1, window_bounds = array<i64: 1, 32, 16>}, {transform_indices = @transform_2, window_bounds = array<i64: 1, 1, 16>}, {transform_indices = @transform_3, window_bounds = array<i64: 1, 32, 16>}, {transform_indices = @transform_4, window_bounds = array<i64: 1, 1, 16>}, {transform_indices = @transform_5, window_bounds = array<i64: 1, 16, 8>}, {transform_indices = @transform_6, window_bounds = array<i64: 1, 1, 8>}, {transform_indices = @transform_7, window_bounds = array<i64: 1, 8, 8>}, {transform_indices = @transform_8, window_bounds = array<i64: 2, 1, 8, 8>}]} {
    %c0_i32 = arith.constant 0 : i32
    %0 = arith.cmpi eq, %arg1, %c0_i32 : i32
    %1 = arith.extui %0 : i1 to i32
    %c0_i32_0 = arith.constant 0 : i32
    %2 = arith.cmpi ne, %1, %c0_i32_0 : i32
    scf.if %2 {
      %c0_32 = arith.constant 0 : index
      %c0_33 = arith.constant 0 : index
      %55 = vector.load %arg2[%c0_32, %c0_33] : memref<8x32xbf16, #tpu.memory_space<vmem>>, vector<8x32xbf16>
      %c0_34 = arith.constant 0 : index
      %c0_35 = arith.constant 0 : index
      %c0_36 = arith.constant 0 : index
      %56 = vector.load %arg5[%c0_34, %c0_35, %c0_36] : memref<1x32x16xbf16, #tpu.memory_space<vmem>>, vector<1x32x16xbf16>
      %57 = vector.shape_cast %56 : vector<1x32x16xbf16> to vector<32x16xbf16>
      %cst_37 = arith.constant dense<0.000000e+00> : vector<8x16xf32>
      %58 = tpu.matmul %55, %57, %cst_37 {dimension_numbers = #tpu.dot_dimension_numbers<[1], [0], [0], [1], [0, 0, 1, 1], [], []>} : vector<8x32xbf16>, vector<32x16xbf16>, vector<8x16xf32> -> vector<8x16xf32>
      %c0_38 = arith.constant 0 : index
      %c0_39 = arith.constant 0 : index
      %c0_40 = arith.constant 0 : index
      %59 = vector.load %arg6[%c0_38, %c0_39, %c0_40] : memref<1x1x16xf32, #tpu.memory_space<vmem>>, vector<1x1x16xf32>
      %60 = vector.shape_cast %59 : vector<1x1x16xf32> to vector<1x16xf32>
      %61 = vector.broadcast %60 : vector<1x16xf32> to vector<8x16xf32>
      %62 = arith.addf %58, %61 : vector<8x16xf32>
      %63 = vector.extract_strided_slice %62 {offsets = [0, 0], sizes = [8, 8], strides = [1, 1]} : vector<8x16xf32> to vector<8x8xf32>
      %64 = arith.truncf %63 : vector<8x8xf32> to vector<8x8xbf16>
      %c0_41 = arith.constant 0 : index
      %c0_42 = arith.constant 0 : index
      %65 = vector.load %arg11[%c0_41, %c0_42] : memref<8x8xbf16, #tpu.memory_space<vmem>>, vector<8x8xbf16>
      tpu.vector_store %arg11[%c0_41, %c0_42], %64 {strides = array<i32>} : memref<8x8xbf16, #tpu.memory_space<vmem>>, vector<8x8xbf16>,
      %66 = vector.extract_strided_slice %62 {offsets = [0, 8], sizes = [8, 8], strides = [1, 1]} : vector<8x16xf32> to vector<8x8xf32>
      %67 = arith.truncf %66 : vector<8x8xf32> to vector<8x8xbf16>
      %c0_43 = arith.constant 0 : index
      %c0_44 = arith.constant 0 : index
      %68 = vector.load %arg12[%c0_43, %c0_44] : memref<8x8xbf16, #tpu.memory_space<vmem>>, vector<8x8xbf16>
      tpu.vector_store %arg12[%c0_43, %c0_44], %67 {strides = array<i32>} : memref<8x8xbf16, #tpu.memory_space<vmem>>, vector<8x8xbf16>,
    } else {
    }
    %c8_i32 = arith.constant 8 : i32
    %3 = arith.muli %arg1, %c8_i32 : i32
    %4 = tpu.assume_multiple %3, 8 : i32
    %5 = arith.index_cast %4 : i32 to index
    %c0 = arith.constant 0 : index
    %6 = vector.load %arg2[%5, %c0] : memref<8x32xbf16, #tpu.memory_space<vmem>>, vector<8x32xbf16>
    %c0_1 = arith.constant 0 : index
    %c0_2 = arith.constant 0 : index
    %c0_3 = arith.constant 0 : index
    %7 = vector.load %arg3[%c0_1, %c0_2, %c0_3] : memref<1x32x16xbf16, #tpu.memory_space<vmem>>, vector<1x32x16xbf16>
    %8 = vector.shape_cast %7 : vector<1x32x16xbf16> to vector<32x16xbf16>
    %cst = arith.constant dense<0.000000e+00> : vector<8x16xf32>
    %9 = tpu.matmul %6, %8, %cst {dimension_numbers = #tpu.dot_dimension_numbers<[1], [0], [0], [1], [0, 0, 1, 1], [], []>} : vector<8x32xbf16>, vector<32x16xbf16>, vector<8x16xf32> -> vector<8x16xf32>
    %c0_4 = arith.constant 0 : index
    %c0_5 = arith.constant 0 : index
    %c0_6 = arith.constant 0 : index
    %10 = vector.load %arg4[%c0_4, %c0_5, %c0_6] : memref<1x1x16xf32, #tpu.memory_space<vmem>>, vector<1x1x16xf32>
    %11 = vector.shape_cast %10 : vector<1x1x16xf32> to vector<1x16xf32>
    %12 = vector.broadcast %11 : vector<1x16xf32> to vector<8x16xf32>
    %13 = arith.addf %9, %12 : vector<8x16xf32>
    %14 = arith.truncf %13 : vector<8x16xf32> to vector<8x16xbf16>
    %15 = vector.extract_strided_slice %14 {offsets = [0, 0], sizes = [8, 8], strides = [1, 1]} : vector<8x16xbf16> to vector<8x8xbf16>
    %16 = vector.extract_strided_slice %14 {offsets = [0, 8], sizes = [8, 8], strides = [1, 1]} : vector<8x16xbf16> to vector<8x8xbf16>
    %17 = tpu.concatenate %15, %16 in 0 : vector<8x8xbf16>, vector<8x8xbf16> -> vector<16x8xbf16>
    %c0_7 = arith.constant 0 : index
    %c0_8 = arith.constant 0 : index
    %18 = vector.load %arg11[%c0_7, %c0_8] : memref<8x8xbf16, #tpu.memory_space<vmem>>, vector<8x8xbf16>
    %cst_9 = arith.constant dense<0.000000e+00> : vector<16x8xf32>
    %19 = tpu.matmul %17, %18, %cst_9 {dimension_numbers = #tpu.dot_dimension_numbers<[1], [1], [0], [0], [0, 0, 1, 0], [], []>} : vector<16x8xbf16>, vector<8x8xbf16>, vector<16x8xf32> -> vector<16x8xf32>
    %cst_10 = arith.constant dense<0xFF800000> : vector<16xf32>
    %20 = vector.multi_reduction <maximumf>, %19, %cst_10 [1] : vector<16x8xf32> to vector<16xf32>
    %21 = vector.shape_cast %20 : vector<16xf32> to vector<16x1xf32>
    %22 = vector.broadcast %21 : vector<16x1xf32> to vector<16x8xf32>
    %23 = arith.subf %19, %22 : vector<16x8xf32>
    %24 = math.exp %23 : vector<16x8xf32>
    %cst_11 = arith.constant dense<0.000000e+00> : vector<16xf32>
    %25 = vector.multi_reduction <add>, %24, %cst_11 [1] : vector<16x8xf32> to vector<16xf32>
    %26 = vector.shape_cast %25 : vector<16xf32> to vector<16x1xf32>
    %27 = tpu.reciprocal %26 : vector<16x1xf32> -> vector<16x1xf32>
    %28 = vector.broadcast %27 : vector<16x1xf32> to vector<16x8xf32>
    %29 = arith.mulf %24, %28 : vector<16x8xf32>
    %30 = vector.extract_strided_slice %29 {offsets = [0, 0], sizes = [8, 8], strides = [1, 1]} : vector<16x8xf32> to vector<8x8xf32>
    %c0_12 = arith.constant 0 : index
    %c0_13 = arith.constant 0 : index
    %c0_14 = arith.constant 0 : index
    %c0_15 = arith.constant 0 : index
    %31 = vector.load %arg10[%c0_12, %c0_13, %c0_14, %c0_15] : memref<2x1x8x8xf32, #tpu.memory_space<vmem>>, vector<1x1x8x8xf32>
    %32 = vector.shape_cast %31 : vector<1x1x8x8xf32> to vector<8x8xf32>
    %33 = vector.shape_cast %30 : vector<8x8xf32> to vector<1x1x8x8xf32>
    tpu.vector_store %arg10[%c0_12, %c0_13, %c0_14, %c0_15], %33 {strides = array<i32>} : memref<2x1x8x8xf32, #tpu.memory_space<vmem>>, vector<1x1x8x8xf32>,
    %34 = vector.extract_strided_slice %29 {offsets = [8, 0], sizes = [8, 8], strides = [1, 1]} : vector<16x8xf32> to vector<8x8xf32>
    %c1 = arith.constant 1 : index
    %c0_16 = arith.constant 0 : index
    %c0_17 = arith.constant 0 : index
    %c0_18 = arith.constant 0 : index
    %35 = vector.load %arg10[%c1, %c0_16, %c0_17, %c0_18] : memref<2x1x8x8xf32, #tpu.memory_space<vmem>>, vector<1x1x8x8xf32>
    %36 = vector.shape_cast %35 : vector<1x1x8x8xf32> to vector<8x8xf32>
    %37 = vector.shape_cast %34 : vector<8x8xf32> to vector<1x1x8x8xf32>
    tpu.vector_store %arg10[%c1, %c0_16, %c0_17, %c0_18], %37 {strides = array<i32>} : memref<2x1x8x8xf32, #tpu.memory_space<vmem>>, vector<1x1x8x8xf32>,
    %38 = arith.truncf %29 : vector<16x8xf32> to vector<16x8xbf16>
    %c0_19 = arith.constant 0 : index
    %c0_20 = arith.constant 0 : index
    %39 = vector.load %arg12[%c0_19, %c0_20] : memref<8x8xbf16, #tpu.memory_space<vmem>>, vector<8x8xbf16>
    %cst_21 = arith.constant dense<0.000000e+00> : vector<16x8xf32>
    %40 = tpu.matmul %38, %39, %cst_21 {dimension_numbers = #tpu.dot_dimension_numbers<[1], [0], [0], [1], [0, 0, 1, 1], [], []>} : vector<16x8xbf16>, vector<8x8xbf16>, vector<16x8xf32> -> vector<16x8xf32>
    %41 = arith.truncf %40 : vector<16x8xf32> to vector<16x8xbf16>
    %42 = vector.extract_strided_slice %41 {offsets = [0, 0], sizes = [8, 8], strides = [1, 1]} : vector<16x8xbf16> to vector<8x8xbf16>
    %43 = vector.extract_strided_slice %41 {offsets = [8, 0], sizes = [8, 8], strides = [1, 1]} : vector<16x8xbf16> to vector<8x8xbf16>
    %44 = tpu.concatenate %42, %43 in 1 : vector<8x8xbf16>, vector<8x8xbf16> -> vector<8x16xbf16>
    %c0_22 = arith.constant 0 : index
    %c0_23 = arith.constant 0 : index
    %c0_24 = arith.constant 0 : index
    %45 = vector.load %arg7[%c0_22, %c0_23, %c0_24] : memref<1x16x8xbf16, #tpu.memory_space<vmem>>, vector<1x16x8xbf16>
    %46 = vector.shape_cast %45 : vector<1x16x8xbf16> to vector<16x8xbf16>
    %cst_25 = arith.constant dense<0.000000e+00> : vector<8x8xf32>
    %47 = tpu.matmul %44, %46, %cst_25 {dimension_numbers = #tpu.dot_dimension_numbers<[1], [0], [0], [1], [0, 0, 1, 1], [], []>} : vector<8x16xbf16>, vector<16x8xbf16>, vector<8x8xf32> -> vector<8x8xf32>
    %c0_26 = arith.constant 0 : index
    %c0_27 = arith.constant 0 : index
    %c0_28 = arith.constant 0 : index
    %48 = vector.load %arg8[%c0_26, %c0_27, %c0_28] : memref<1x1x8xf32, #tpu.memory_space<vmem>>, vector<1x1x8xf32>
    %49 = vector.shape_cast %48 : vector<1x1x8xf32> to vector<1x8xf32>
    %50 = vector.broadcast %49 : vector<1x8xf32> to vector<8x8xf32>
    %51 = arith.addf %47, %50 : vector<8x8xf32>
    %c0_29 = arith.constant 0 : index
    %c0_30 = arith.constant 0 : index
    %c0_31 = arith.constant 0 : index
    %52 = vector.load %arg9[%c0_29, %c0_30, %c0_31] : memref<1x8x8xf32, #tpu.memory_space<vmem>>, vector<1x8x8xf32>
    %53 = vector.shape_cast %52 : vector<1x8x8xf32> to vector<8x8xf32>
    %54 = vector.shape_cast %51 : vector<8x8xf32> to vector<1x8x8xf32>
    tpu.vector_store %arg9[%c0_29, %c0_30, %c0_31], %54 {strides = array<i32>} : memref<1x8x8xf32, #tpu.memory_space<vmem>>, vector<1x8x8xf32>,
    return
  }
  func.func @transform_0(%arg0: i32, %arg1: i32) -> (i32, i32) {
    %c0_i32 = arith.constant 0 : i32
    %c0_i32_0 = arith.constant 0 : i32
    %c0_i32_1 = arith.constant 0 : i32
    return %c0_i32, %c0_i32_0 : i32, i32
  }
  func.func @transform_1(%arg0: i32, %arg1: i32) -> (i32, i32, i32) {
    %c0_i32 = arith.constant 0 : i32
    %c0_i32_0 = arith.constant 0 : i32
    %c0_i32_1 = arith.constant 0 : i32
    return %arg0, %c0_i32, %c0_i32_0 : i32, i32, i32
  }
  func.func @transform_2(%arg0: i32, %arg1: i32) -> (i32, i32, i32) {
    %c0_i32 = arith.constant 0 : i32
    %c0_i32_0 = arith.constant 0 : i32
    %c0_i32_1 = arith.constant 0 : i32
    return %arg0, %c0_i32, %c0_i32_0 : i32, i32, i32
  }
  func.func @transform_3(%arg0: i32, %arg1: i32) -> (i32, i32, i32) {
    %c0_i32 = arith.constant 0 : i32
    %c0_i32_0 = arith.constant 0 : i32
    %c0_i32_1 = arith.constant 0 : i32
    return %arg0, %c0_i32, %c0_i32_0 : i32, i32, i32
  }
  func.func @transform_4(%arg0: i32, %arg1: i32) -> (i32, i32, i32) {
    %c0_i32 = arith.constant 0 : i32
    %c0_i32_0 = arith.constant 0 : i32
    %c0_i32_1 = arith.constant 0 : i32
    return %arg0, %c0_i32, %c0_i32_0 : i32, i32, i32
  }
  func.func @transform_5(%arg0: i32, %arg1: i32) -> (i32, i32, i32) {
    %c0_i32 = arith.constant 0 : i32
    %c0_i32_0 = arith.constant 0 : i32
    %c0_i32_1 = arith.constant 0 : i32
    return %arg0, %c0_i32, %c0_i32_0 : i32, i32, i32
  }
  func.func @transform_6(%arg0: i32, %arg1: i32) -> (i32, i32, i32) {
    %c0_i32 = arith.constant 0 : i32
    %c0_i32_0 = arith.constant 0 : i32
    %c0_i32_1 = arith.constant 0 : i32
    return %arg0, %c0_i32, %c0_i32_0 : i32, i32, i32
  }
  func.func @transform_7(%arg0: i32, %arg1: i32) -> (i32, i32, i32) {
    %c0_i32 = arith.constant 0 : i32
    %c0_i32_0 = arith.constant 0 : i32
    return %arg0, %arg1, %c0_i32 : i32, i32, i32
  }
  func.func @transform_8(%arg0: i32, %arg1: i32) -> (i32, i32, i32, i32) {
    %c0_i32 = arith.constant 0 : i32
    %c0_i32_0 = arith.constant 0 : i32
    %c0_i32_1 = arith.constant 0 : i32
    return %c0_i32, %arg0, %arg1, %c0_i32_0 : i32, i32, i32, i32
  }
}

</mosaic_0001>

<bundles_post_ra>
// kernel: tpu_custom_call.1
= control target key start
LH: loop header
LB: loop body
LE: loop exit
PB: predicated region body
PF: predicated region fallthrough
CT: control target
= control target key end

     0   :  { %s1494_s0 = inlined_call_operand.vmem [shape: bf16[8,32], index: 0, kind: input, shape index: {}]   ;;  %s1495_s1 = inlined_call_operand.vmem [shape: bf16[2,32,16], index: 1, kind: input, shape index: {}]   ;;  %s1496_s2 = inlined_call_operand.vmem [shape: f32[2,1,16], index: 2, kind: input, shape index: {}]   ;;  %s1497_s3 = inlined_call_operand.vmem [shape: bf16[2,32,16], index: 3, kind: input, shape index: {}]   ;;  %s1498_s4 = inlined_call_operand.vmem [shape: f32[2,1,16], index: 4, kind: input, shape index: {}]   ;;  %s1499_s5 = inlined_call_operand.vmem [shape: bf16[2,16,8], index: 5, kind: input, shape index: {}]   ;;  %s1500_s6 = inlined_call_operand.vmem [shape: f32[2,1,8], index: 6, kind: input, shape index: {}]   ;;  %s1501_s7 = inlined_call_operand.hbm [shape: f32[2,8,8], index: 7, kind: output, shape index: {0}]   ;;  %s1502_s8 = inlined_call_operand.hbm [shape: f32[2,2,8,8], index: 8, kind: output, shape index: {1}]  }
   0x1   :  { %1505 = sst [smem:[#allocation10_spill]] %s1494_s0 }
   0x2   :  { %1506 = sst [smem:[#allocation11_spill]] %s1495_s1 }
   0x3   :  { %1507 = sst [smem:[#allocation12_spill]] %s1496_s2 }
   0x4   :  { %1508 = sst [smem:[#allocation13_spill]] %s1497_s3 }
   0x5   :  { %1509 = sst [smem:[#allocation14_spill]] %s1498_s4 }
   0x6   :  { %1510 = sst [smem:[#allocation15_spill]] %s1499_s5 }
   0x7   :  { %14 = vsyncpa [#allocation5], 0 }
   0x8   :  { %16 = vsyncpa [#allocation5 + $0x1], 0 }
   0x9   :  { %17 = vsyncpa [#allocation7], 0 }
   0xa   :  { %19 = vsyncpa [#allocation7 + $0x1], 0  ;;  %s1285_s27 = smov 0   ;;  %s1287_s28 = smov 0  }
   0xb   :  { %s1289_s29 = smov 0   ;;  %s1291_s30 = smov 0  }
   0xc   :  { %s1293_s9 = smov 0   ;;  %s1295_s10 = smov 0  }
   0xd LB: > { %s957_s11 = sadd.s32 4294967295, %s1230_s10   ;;  %s958_s12 = sadd.s32 4294967294, %s1230_s10   ;;  %s1230_s10 = sphi %s1295_s10, %s25_s10   ;;  %s1226_s9 = sphi %s1293_s9, %s1525_s9   ;;  %s1222_s30 = sphi %s1291_s30, %s1524_s30   ;;  %s1218_s29 = sphi %s1289_s29, %s1523_s29   ;;  %s1214_s28 = sphi %s1287_s28, %s1522_s28   ;;  %s1210_s27 = sphi %s1285_s27, %s1521_s27  }
   0xe   : > { %s37_s13 = sadd.s32 1, %s1226_s9  ;;  %s223_s14 = sadd.s32 1, %s1218_s29 }
   0xf   : > { %p39_p0 = scmp.ge.s32.totalorder %s37_s13, 2  ;;  %p233_p1 = scmp.ne.s32.totalorder %s1218_s29, %s1214_s28 }
  0x10   : > { %p234_p2 = scmp.eq.s32.totalorder %s957_s11, 1  ;;  %p239_p3 = scmp.ne.s32.totalorder %s1214_s28, %s1210_s27 }
  0x11   : > { %s1527_s13 = smov (%p39_p0, %s37_s13), 0  ;;  %p240_p5 = scmp.eq.s32.totalorder %s958_s12, 1 }
  0x12   : > { %p1325_p4 = por %p234_p2, %p233_p1  ;;  %s218_s16 = ssub.s32 %s1226_s9, %s1527_s13 }
  0x13   : > { %p961_p6 = scmp.ge.s32.totalorder %s1230_s10, 1  ;;  %p221_p7 = scmp.eq.s32.totalorder %s218_s16, 0 }
  0x14   : > { %p1332_p8 = por %p240_p5, %p239_p3  ;;  %p331_p9 = scmp.lt.s32.totalorder %s1230_s10, 3 }
  0x15   : > { %s1338_s18 = scalar_select %p221_p7, %s1218_s29, %s223_s14  }
  0x16   : > { %p332_p10 = pnand %p961_p6, %p331_p9 }
  0x17   : > { %p389_p11 = scmp.lt.s32.totalorder (!%p332_p10), %s1222_s30, 1  ;;  %v1232_v0 = vmov (!%p332_p10), 0.0   ;;  %vm1233_vm0 = vmmov (!%p332_p10), 0   ;;  %s1513_s1 = sld [smem:[#allocation11_spill]] (!%p332_p10)  ;;  %vm442_vm1 = vcmask (!%p332_p10), 261120   ;;  %vm487_vm2 = vcmask (!%p332_p10), 60416  }
  0x18   : > { %335 = sbr.rel (%p332_p10) target bundleno = 1472 (0x5c0), region = 48  ;;  %1015 = vmatprep.subr.bf16.mxu1 (!%p332_p10), %v1232_v0  ;;  %1019 = vmatprep.mubr.msk.bf16.mxu1 (!%p332_p10), %vm1233_vm0, %v1232_v0  ;;  %s1514_s3 = sld [smem:[#allocation13_spill]] (!%p332_p10)  ;;  %vm579_vm3 = vcmask (!%p332_p10), 64512   ;;  %vm574_vm4 = vcmask (!%p332_p10), 1043456   ;;  %vm723_vm5 = vcmask (!%p332_p10), 130048  }
  0x19   : > { %1007 = vmatprep.subr.bf16.mxu0 (!%p332_p10), %v1232_v0  ;;  %1011 = vmatprep.mubr.msk.bf16.mxu0 (!%p332_p10), %vm1233_vm0, %v1232_v0  ;;  %s1515_s0 = sld [smem:[#allocation10_spill]] (!%p332_p10)  ;;  %s1516_s2 = sld [smem:[#allocation12_spill]] (!%p332_p10) }
  0x1a   : > { %s1517_s4 = sld [smem:[#allocation14_spill]] (!%p332_p10)  ;;  %s1381_s11 = sand.u32 (!%p332_p10), 1, %s1214_s28  }
  0x1b   : > { %s963_s12 = sshll.u32 (!%p332_p10), %s1381_s11, 4  ;;  %s1518_s5 = sld [smem:[#allocation15_spill]] (!%p332_p10) }
  0x1c   : > { %s1385_s14 = scalar_lea.vmem (!%p332_p10), [#allocation6], %s963_s12  ;;  %s1504_s24 = sshll.u32 (!%p332_p10), %s1222_s30, 7 }
  0x1d   : > { %s1405_s12 = scalar_lea.hbm (!%p332_p10), %s1502_s8, %s1504_s24 }
  0x1f   : > { %s1343_s19 = scalar_select %p389_p11, %s1222_s30, 1  ;;  %v501_v5 = vld [vmem:[%s1515_s0] sm:$0xf] }
  0x20   : > { %v418_v6 = vld [vmem:[%s1515_s0] sm:$0xf] }
  0x21   : > { %s991_s20 = sshll.u32 %s1343_s19, 4  ;;  %s396_s22 = scalar_lea.vmem %s1516_s2, %s1343_s19 }
  0x22   : > { %s393_s23 = scalar_lea.vmem %s1513_s1, %s991_s20  ;;  %s401_s26 = scalar_lea.vmem %s1514_s3, %s991_s20  ;;  %v975_v7 = vld [vmem:[%s396_s22] ss:$0 sm:$0xff] }
  0x23   : > { %v1107_v1 = vld [vmem:[%s393_s23] sm:$0xff]   ;;  %v1108_v2 = vld [vmem:[%s393_s23 + $0x8] sm:$0xff]   ;;  %s404_s25 = scalar_lea.vmem %s1517_s4, %s1343_s19  ;;  %s993_s16 = sshll.u32 %s1343_s19, 3 }
  0x24   : > { %1016 = vmatpush3.bf16.msra.mxu1 %v1107_v1  ;;  %v1109_v3 = vld [vmem:[%s401_s26] sm:$0xff]   ;;  %v1110_v4 = vld [vmem:[%s401_s26 + $0x8] sm:$0xff]   ;;  %s1234_s26 = smov 120   ;;  %s409_s22 = scalar_lea.vmem %s1518_s5, %s993_s16 }
  0x25   : > { %1017 = vmatprep.subr.bf16.mxu1 %v1232_v0  ;;  %1008 = vmatpush3.bf16.msra.mxu0 %v1109_v3  ;;  %v970_v9 = vld [vmem:[%s404_s25] ss:$0 sm:$0xff]  ;;  %s1503_s23 = smov 8   ;;  %s800_s16 = sshll.u32 %s1385_s14, 4  ;;  %s1408_s16 = int_to_ptr.vmem [resolvable:$true] %s800_s16 }
  0x26   : > { %1009 = vmatprep.subr.bf16.mxu0 %v1232_v0  ;;  %v1111_v52 = vld [vmem:[%s409_s22] sm:$0xff]   ;;  %s773_s20 = scalar_lea.sflag [#allocation7], %s1381_s11  ;;  %s1120_s21 = scalar_lea.vmem %s1408_s16, 256 }
  0x27   : > { %p1121_p12 = scmp.ne.s32.totalorder %s1408_s16, %s1120_s21  ;;  %s1236_s22 = smov [#allocation6]  }
  0x28   : > { %1018 = vmatpush3.bf16.msra.mxu1 %v1108_v2 }
  0x29   : > { %1029 = vmatprep.subr.bf16.mxu1 %v1232_v0  ;;  %1010 = vmatpush3.bf16.msra.mxu0 %v1110_v4  ;;  %p1122_p13 = pnand %p1121_p12, %p1325_p4 }
  0x2a   : > { %1023 = vmatprep.subr.bf16.mxu0 %v1232_v0 }
  0x2b   : > { %1020 = vmatmul.mubr.msk.bf16.vlgmr.msra.gmra.mrb[0].mxu1 %vm442_vm1, %v501_v5  ;;  %p1123_p0 = pneg %p1122_p13 }
  0x2c   : > { %1031 = vmatprep.mubr.msk.bf16.mxu1 %vm1233_vm0, %v1232_v0  ;;  %1012 = vmatmul.mubr.msk.bf16.vlgmr.msra.gmra.mrb[0].mxu0 %vm442_vm1, %v418_v6 }
  0x2d   : > { %1025 = vmatprep.mubr.msk.bf16.mxu0 %vm1233_vm0, %v1232_v0 }
  0xfe   : > { %v563_v8 = vpop.f32.mrb[0].mxu1 }
  0xff   : > { %v564_v10 = vadd.f32 %v975_v7, %v563_v8  ;;  %v1021_v11 = vpop.f32.mrb[1].mxu1  ;;  %v480_v13 = vpop.f32.mrb[0].mxu0 }
 0x100   : > { %v566_v12 = vpop.f32.mrb[2].mxu1  ;;  %v481_v16 = vadd.f32 %v970_v9, %v480_v13  ;;  %v1013_v17 = vpop.f32.mrb[1].mxu0 }
 0x101   : > { %v569_v14 = vpack.c.bf16 %v564_v10, %v564_v10  ;;  %v1022_v15 = vpop.f32.mrb[3].mxu1  ;;  %v483_v18 = vpop.f32.mrb[2].mxu0 }
 0x102   : > { %v486_v20 = vpack.c.bf16 %v481_v16, %v481_v16  ;;  %v1014_v21 = vpop.f32.mrb[3].mxu0 }
 0x103   : > { %v571_v19 = vrot.slane %v569_v14, 4 }
 0x104   : > { %488 = vst.msk [vmem:[#allocation2] sm:$0xf] %vm487_vm2, %v486_v20 }
 0x105   : > { %572 = vrot.lane.b32.xlu0 %v571_v19, %s1234_s26 }
 0x10b   : > { %v578_v22 = vld [vmem:[#allocation2] sm:$0xf] }
 0x10c   : > { %v583_v23 = vsel %vm579_vm3, %v578_v22, 0 }
 0x10d   : > { %1024 = vmatpush3.bf16.xpose.msra.mxu0 %v583_v23 }
 0x10e   : > { %1035 = vmatprep.subr.bf16.mxu0 %v1232_v0 }
 0x177   : > { %v573_v24 = vpop.permute.xlu0 %572 }
 0x178   : > { %v577_v25 = vsel %vm574_vm4, %v569_v14, %v573_v24 }
 0x179   : > { %1026 = vmatmul.mubr.msk.bf16.vlgmr.msra.gmra.mrb[4].mxu0 %vm579_vm3, %v577_v25 }
 0x17a   : > { %1037 = vmatprep.mubr.msk.bf16.mxu0 %vm1233_vm0, %v1232_v0  ;;  %1036 = vmatpush3.bf16.msra.mxu0 %v1111_v52 }
 0x24c   : > { %v619_v26 = vpop.f32.mrb[4].mxu0 }
 0x24d   : > { %v1027_v27 = vpop.f32.mrb[5].mxu0  ;;  %v626_v28 = vsel %vm579_vm3, %v619_v26, -inf }
 0x24e   : > { %627 = vmax.xlane.f32.xlu0 %v626_v28  ;;  %v622_v29 = vpop.f32.mrb[6].mxu0 }
 0x24f   : > { %v1028_v30 = vpop.f32.mrb[7].mxu0  ;;  %v629_v31 = vsel %vm579_vm3, %v622_v29, -inf }
 0x250   : > { %630 = vmax.xlane.f32.xlu1 %v629_v31 }
 0x2db   : > { %v628_v32 = vpop.xlane.xlu0 %627 }
 0x2dc   : > { %v632_v33 = vsub.f32 %v619_v26, %v628_v32 }
 0x2dd   : > { %v631_v34 = vpop.xlane.xlu1 %630 }
 0x2de   : > { %v634_v35 = vmul.f32 1.442695, %v632_v33  ;;  %v633_v36 = vsub.f32 %v622_v29, %v631_v34 }
 0x2e0   : > { %1112 = vpow2.f32 %v634_v35  ;;  %v636_v37 = vmul.f32 1.442695, %v633_v36 }
 0x2e2   : > { %1114 = vpow2.f32 %v636_v37 }
 0x2ea   : > { %v1113_v38 = vpop.eup %1112 }
 0x2eb   : > { %v638_v39 = vsel %vm579_vm3, %v1113_v38, 0.0 }
 0x2ec   : > { %v1115_v40 = vpop.eup %1114  ;;  %639 = vadd.xlane.f32.xlu1 %v638_v39 }
 0x2ed   : > { %v641_v41 = vsel %vm579_vm3, %v1115_v40, 0.0 }
 0x2f0   : > { %642 = vadd.xlane.f32.xlu1 %v641_v41 }
 0x301   : > { %492 = vrot.lane.b32.xlu1 %v486_v20, %s1234_s26 }
 0x379   : > { %v640_v42 = vpop.xlane.xlu1 %639 }
 0x37a   : > { %1116 = vrcp.f32 %v640_v42 }
 0x37d   : > { %v643_v43 = vpop.xlane.xlu1 %642 }
 0x37e   : > { %1118 = vrcp.f32 %v643_v43 }
 0x381   : > { %v493_v44 = vpop.permute.xlu1 %492 }
 0x382   : > { %495 = vst.msk [vmem:[#allocation3] sm:$0xf] %vm487_vm2, %v493_v44 }
 0x384   : > { %v1117_v45 = vpop.eup %1116 }
 0x385   : > { %v646_v46 = vmul.f32 %v1117_v45, %v1113_v38 }
 0x387   : > { %648 = vst.msk [vmem:[%s1385_s14] sm:$0xff] %vm579_vm3, %v646_v46 }
 0x388   : > { %v1119_v47 = vpop.eup %1118 }
 0x389   : > { %v647_v48 = vmul.f32 %v1119_v47, %v1115_v40  ;;  %v652_v49 = vld [vmem:[#allocation3] sm:$0xf] }
 0x38a   : > { %v657_v50 = vsel %vm574_vm4, %v652_v49, 0 }
 0x38b   : > { %1030 = vmatpush3.bf16.msra.mxu1 %v657_v50  ;;  %v651_v51 = vpack.c.bf16 %v647_v48, %v646_v46  ;;  %980 = vst.msk [vmem:[%s1385_s14 + $0x8] sm:$0xff] %vm579_vm3, %v647_v48 }
 0x38e   : > { %1032 = vmatmul.mubr.msk.bf16.vlgmr.msra.gmra.mrb[4].mxu1 %vm579_vm3, %v651_v51 }
 0x461   : > { %v693_v53 = vpop.f32.mrb[4].mxu1 }
 0x462   : > { %v1033_v54 = vpop.f32.mrb[5].mxu1 }
 0x463   : > { %v696_v55 = vpop.f32.mrb[6].mxu1 }
 0x464   : > { %v700_v56 = vpack.c.bf16 %v696_v55, %v693_v53  ;;  %v1034_v57 = vpop.f32.mrb[7].mxu1 }
 0x466   : > { %v702_v58 = vrot.slane %v700_v56, 4 }
 0x468   : > { %703 = vrot.lane.b32.xlu1 %v702_v58, %s1503_s23  ;;  %s1124_s23 = sshll.u32 %s1236_s22, 4  ;;  %s1125_s23 = int_to_ptr.vmem [resolvable:$false] %s1124_s23 }
 0x469   : > { %s1126_s0 = scalar_lea.vmem %s1125_s23, 512  ;;  %p1127_p1 = scmp.lt.s32.totalorder %s1408_s16, %s1125_s23 }
 0x46a   : > { %p1128_p2 = scmp.lt.s32.totalorder %s1126_s0, %s1120_s21 }
 0x46c   : > { %p1129_p3 = por %p1128_p2, %p1127_p1 }
 0x46e   : > { %p1130_p5 = pnand %p1129_p3, %p1123_p0 }
 0x4da   : > { %v704_v59 = vpop.permute.xlu1 %703 }
 0x4db   : > { %v707_v60 = vsel %vm579_vm3, %v700_v56, %v704_v59 }
 0x4dc   : > { %1038 = vmatmul.mubr.msk.bf16.vlgmr.msra.gmra.mrb[8].mxu0 %vm723_vm5, %v707_v60 }
 0x4dd   : > { %1133 = shalt.err (!%p1130_p5)
}
 0x4de   : > { %s1134_s14 = scalar_lea.hbm %s1405_s12, 256  ;;  %s1138_s22 = scalar_lea.hbm %s1502_s8, 512 }
 0x4df   : > { %p1135_p6 = scmp.ne.s32.totalorder %s1405_s12, %s1134_s14  ;;  %p1139_p10 = scmp.lt.u32.totalorder %s1405_s12, %s1502_s8 }
 0x4e0   : > { %p1140_p11 = scmp.lt.u32.totalorder %s1138_s22, %s1134_s14  ;;  %p1142_p13 = scmp.lt.u32.totalorder %s1134_s14, %s1405_s12 }
 0x4e1   : > { %p1136_p7 = pnand %p1135_p6, %p1325_p4 }
 0x4e2   : > { %p1141_p12 = por %p1140_p11, %p1139_p10 }
 0x4e3   : > { %p1137_p9 = pneg %p1136_p7 }
 0x4e4   : > { %p1143_p0 = por %p1142_p13, %p1141_p12 }
 0x4e6   : > { %p1144_p1 = pnand %p1143_p0, %p1137_p9 }
 0x4e8   : > { %1147 = shalt.err (!%p1144_p1)
}
 0x4e9   : > { %s1237_s0 = smov 128   ;;  %s1238_s21 = smov 256  }
 0x4ea   : > { %s1519_s25 = smov 8   ;;  %s962_s24 = sshll.u32 %s1381_s11, 3 }
 0x4eb   : > { %1042 = dma.vmem_to_hbm [thread:$0]  (%p1325_p4), %s1408_s16, 256, %s1405_s12, %s773_s20, %s1237_s0, %s1238_s21, %s1519_s25  }
 0x4ec   : > { %s412_s22 = scalar_lea.vmem %s1500_s6, %s1343_s19  ;;  %s381_s23 = scalar_lea.vmem [#allocation4], %s962_s24 }
 0x4ed   : > { %v982_v61 = vld [vmem:[%s412_s22] ss:$0 sm:$0xff]  ;;  %s787_s1 = sshll.u32 %s381_s23, 4  ;;  %s1520_s2 = sshll.u32 %s1222_s30, 7  ;;  %s1447_s1 = int_to_ptr.vmem [resolvable:$true] %s787_s1 }
 0x4ee   : > { %s1445_s5 = scalar_lea.hbm %s1501_s7, %s1520_s2  ;;  %s768_s19 = scalar_lea.sflag [#allocation5], %s1381_s11 }
 0x4ef   : > { %s1148_s12 = scalar_lea.vmem %s1447_s1, 128  ;;  %s1239_s30 = smov [#allocation4]  }
 0x4f0   : > { %p1149_p2 = scmp.ne.s32.totalorder %s1447_s1, %s1148_s12  ;;  %s1152_s16 = sshll.u32 %s1239_s30, 4  ;;  %s1153_s16 = int_to_ptr.vmem [resolvable:$false] %s1152_s16 }
 0x4f1   : > { %s1154_s2 = scalar_lea.vmem %s1153_s16, 256  ;;  %p1155_p6 = scmp.lt.s32.totalorder %s1447_s1, %s1153_s16 }
 0x4f2   : > { %p1150_p3 = pnand %p1149_p2, %p1325_p4  ;;  %p1156_p7 = scmp.lt.s32.totalorder %s1154_s2, %s1148_s12 }
 0x4f4   : > { %p1151_p5 = pneg %p1150_p3  ;;  %p1157_p9 = por %p1156_p7, %p1155_p6 }
 0x4f6   : > { %p1158_p10 = pnand %p1157_p9, %p1151_p5 }
 0x5af   : > { %v760_v62 = vpop.f32.mrb[8].mxu0 }
 0x5b0   : > { %v761_v63 = vadd.f32 %v982_v61, %v760_v62  ;;  %v1039_v0 = vpop.f32.mrb[9].mxu0 }
 0x5b1   : > { %v763_v1 = vpop.f32.mrb[10].mxu0 }
 0x5b2   : > { %v1040_v2 = vpop.f32.mrb[11].mxu0  ;;  %766 = vst.msk [vmem:[%s381_s23] sm:$0xff] %vm579_vm3, %v761_v63 }
 0x5b3   : > { %1161 = shalt.err (!%p1158_p10)
}
 0x5b4   : > { %s1162_s3 = scalar_lea.hbm %s1445_s5, 128  ;;  %s1166_s20 = scalar_lea.hbm %s1501_s7, 256 }
 0x5b5   : > { %p1163_p11 = scmp.ne.s32.totalorder %s1445_s5, %s1162_s3  ;;  %p1167_p0 = scmp.lt.u32.totalorder %s1445_s5, %s1501_s7 }
 0x5b6   : > { %p1168_p1 = scmp.lt.u32.totalorder %s1166_s20, %s1162_s3  ;;  %p1170_p3 = scmp.lt.u32.totalorder %s1162_s3, %s1445_s5 }
 0x5b7   : > { %p1164_p12 = pnand %p1163_p11, %p1325_p4 }
 0x5b8   : > { %p1169_p2 = por %p1168_p1, %p1167_p0 }
 0x5b9   : > { %p1165_p13 = pneg %p1164_p12 }
 0x5ba   : > { %p1171_p5 = por %p1170_p3, %p1169_p2 }
 0x5bc   : > { %p1172_p6 = pnand %p1171_p5, %p1165_p13 }
 0x5be   : > { %1175 = shalt.err (!%p1172_p6)
}
 0x5bf   : > { %1041 = dma.vmem_to_hbm [thread:$0]  (%p1325_p4), %s1447_s1, 128, %s1445_s5, %s768_s19  }
 0x5c0 PF: > { %p1052_p7 = scmp.ge.s32.totalorder %s1230_s10, 2  ;;  %s815_s25 = sand.u32 1, %s1210_s27  }
 0x5c1   : > { %s816_s24 = scalar_lea.sflag [#allocation5], %s815_s25 }
 0x5c2   : > { %p1046_p9 = pnand %p1052_p7, %p1332_p8 }
 0x5c4   : > { %1201 = dma.done.wait (!%p1046_p9), %s816_s24, 128  }
 0x5c5   : > { %1203 = vsyncadd (!%p1046_p9), %s816_s24, 4294967168  ;;  %s825_s26 = scalar_lea.sflag [#allocation7], %s815_s25 }
 0x5c6   : > { %1205 = dma.done.wait (!%p1046_p9), %s825_s26, 256  }
 0x5c7   : > { %1207 = vsyncadd (!%p1046_p9), %s825_s26, 4294967040  ;;  %s25_s10 = sadd.s32 1, %s1230_s10   ;;  %s1521_s27 = smov %s1214_s28 }
 0x5c8   : > { %p22_p10 = scmp.ge.s32.totalorder %s25_s10, 4   ;;  %s1522_s28 = smov %s1218_s29 }
 0x5c9   : > { %s1523_s29 = smov %s1338_s18  ;;  %s1524_s30 = smov %s1226_s9 }
 0x5ca   : > { %s1525_s9 = smov %s1527_s13  ;;  %24 = sbr.rel (!%p22_p10) target bundleno = 13 (0xd), region = 121 }
 0x5d1   :  { %830 = vsyncpa [#allocation5], 1 }
 0x5d2   :  { %832 = vsyncpa [#allocation5 + $0x1], 1 }
 0x5d3   :  { %833 = vsyncpa [#allocation7], 1 }
 0x5d4   :  { %835 = vsyncpa [#allocation7 + $0x1], 1 }

</bundles_post_ra>
